<compile_context>
chip_gen: v6e
topology: v6e:2x2x1
jax: 0.10.0
libtpu: 0.0.40
codegen_flags: <defaults>
</compile_context>

<pallas_src>
import math
import functools

import jax
import jax.numpy as jnp
from jax.experimental import pallas as pl
from jax.experimental.pallas import tpu as pltpu


def _round_up(x, m):
    return ((x + m - 1) // m) * m


# ---------------------------------------------------------------------------
# Kernels
# ---------------------------------------------------------------------------
def _linear_kernel(x_ref, wt_ref, o_ref, acc_ref):
    """Eval path: out[i] = sum_k x[i, k] @ Wt[k] (dropout is identity)."""
    k = pl.program_id(1)

    @pl.when(k == 0)
    def _():
        acc_ref[...] = jnp.zeros_like(acc_ref)

    acc_ref[...] += jnp.dot(
        x_ref[...], wt_ref[...], preferred_element_type=jnp.float32
    )

    @pl.when(k == pl.num_programs(1) - 1)
    def _():
        o_ref[...] = acc_ref[...].astype(o_ref.dtype)


def _dropout_linear_kernel(x_ref, bits_ref, wt_ref, o_ref, acc_ref, *,
                           threshold, scale):
    """Training path: out = dropout(x, p) @ Wt.

    keep iff bits >= threshold (P(keep) = 1 - p, integer compare, no float
    converts); the 1/(1-p) scale is applied to the small (TM, C) accumulator
    at the final K step (exact, since matmul is linear in the scale).
    """
    k = pl.program_id(1)

    @pl.when(k == 0)
    def _():
        acc_ref[...] = jnp.zeros_like(acc_ref)

    keep = bits_ref[...] >= jnp.uint32(threshold)
    xd = jnp.where(keep, x_ref[...], jnp.zeros_like(x_ref[...]))
    acc_ref[...] += jnp.dot(xd, wt_ref[...], preferred_element_type=jnp.float32)

    @pl.when(k == pl.num_programs(1) - 1)
    def _():
        o_ref[...] = (acc_ref[...] * jnp.float32(scale)).astype(o_ref.dtype)


# ---------------------------------------------------------------------------
# Wrapper module
# ---------------------------------------------------------------------------
class SGC:
    """JAX/Pallas port of downstream/TextSGC/models.py::SGC (bias=False)."""

    def __init__(self, nfeat, nclass, degree, combine, bias=False, key=None):
        assert not bias, "reference module is constructed with bias=False"
        self.dropout = 0.95
        self.degree = degree          # unused in forward (matches reference)
        self.combine = combine
        self.nfeat = nfeat
        self.nclass = nclass

        if key is None:
            key = jax.random.PRNGKey(0)
        k1, k2 = jax.random.split(key)
        # Xavier-normal init: std = sqrt(2 / (fan_in + fan_out)),
        # torch Linear weight shape is (nclass, nfeat).
        std = math.sqrt(2.0 / (nfeat + nclass))
        self.W = std * jax.random.normal(k1, (nclass, nfeat), dtype=jnp.float32)
        self.W2 = std * jax.random.normal(k2, (nclass, nfeat), dtype=jnp.float32)

        # --- Tiling / padding decided once at init ------------------------
        # K (feature) tile: up to 1024, multiple of 128.
        self.TK = min(1024, _round_up(nfeat, 128))
        self.Fp = _round_up(nfeat, self.TK)
        # Class dim padded to a lane-dense multiple of 128 (unmasked stores,
        # better MXU column utilization); sliced back after the kernel.
        self.Cp = _round_up(nclass, 128)

        # Pre-transposed, zero-padded weights: (Fp, Cp). Built once, not per call.
        def _pad_wt(w):
            wt = jnp.zeros((self.Fp, self.Cp), dtype=jnp.float32)
            return wt.at[:nfeat, :nclass].set(w.T)

        self.Wt = _pad_wt(self.W)     # used when combine == 'max'
        self.Wt2 = _pad_wt(self.W2)   # used when combine == 'cat'

        # Integer dropout threshold: keep iff u32 bits >= threshold.
        self._keep_threshold = int(round(self.dropout * (2 ** 32)))
        self._keep_scale = 1.0 / (1.0 - self.dropout)

    def __call__(self, x, *, training=False, seed=0):
        if self.combine == "cat":
            wt = self.Wt2
        elif self.combine == "max":
            wt = self.Wt
        else:
            raise ValueError(f"unknown combine: {self.combine}")

        N, F = x.shape
        assert F == self.nfeat, f"expected nfeat={self.nfeat}, got {F}"
        TK, Fp, Cp = self.TK, self.Fp, self.Cp

        # Row tile: big (512) when there are many rows, else round N up to 8.
        TM = min(512, _round_up(N, 8))
        Np = _round_up(N, TM)

        # Zero-pad x to the tiled shape (zeros contribute nothing to the matmul).
        if Np != N or Fp != F:
            x_p = jnp.zeros((Np, Fp), dtype=x.dtype).at[:N, :F].set(x)
        else:
            x_p = x

        grid = (Np // TM, Fp // TK)
        out_shape = jax.ShapeDtypeStruct((Np, Cp), jnp.float32)

        x_spec = pl.BlockSpec((TM, TK), lambda i, k: (i, k))
        bits_spec = pl.BlockSpec((TM, TK), lambda i, k: (i, k))
        wt_spec = pl.BlockSpec((TK, Cp), lambda i, k: (k, 0))   # independent of i
        o_spec = pl.BlockSpec((TM, Cp), lambda i, k: (i, 0))    # resident over k
        scratch = [pltpu.VMEM((TM, Cp), jnp.float32)]
        cparams = pltpu.CompilerParams(
            dimension_semantics=("parallel", "arbitrary"))

        if not training:
            cost = pl.CostEstimate(
                flops=2 * Np * Fp * Cp,
                transcendentals=0,
                bytes_accessed=4 * (Np * Fp + (Np // TM) * Fp * Cp + Np * Cp))
            out = pl.pallas_call(
                _linear_kernel,
                out_shape=out_shape,
                grid_spec=pltpu.PrefetchScalarGridSpec(
                    num_scalar_prefetch=0,
                    grid=grid,
                    in_specs=[x_spec, wt_spec],
                    out_specs=o_spec,
                    scratch_shapes=scratch),
                compiler_params=cparams,
                cost_estimate=cost,
            )(x_p, wt)
        else:
            # Deterministic dropout bits from jax.random (portable: no TPU-only
            # PRNG primitives in the kernel). Padded region gets bits=0 -> drop,
            # but x there is zero anyway.
            bits = jax.random.bits(
                jax.random.PRNGKey(seed), (N, F), dtype=jnp.uint32)
            if Np != N or Fp != F:
                bits_p = jnp.zeros((Np, Fp), dtype=jnp.uint32).at[:N, :F].set(bits)
            else:
                bits_p = bits

            kernel = functools.partial(
                _dropout_linear_kernel,
                threshold=self._keep_threshold,
                scale=self._keep_scale)
            cost = pl.CostEstimate(
                flops=2 * Np * Fp * Cp,
                transcendentals=0,
                bytes_accessed=4 * (2 * Np * Fp + (Np // TM) * Fp * Cp + Np * Cp))
            out = pl.pallas_call(
                kernel,
                out_shape=out_shape,
                grid_spec=pltpu.PrefetchScalarGridSpec(
                    num_scalar_prefetch=0,
                    grid=grid,
                    in_specs=[x_spec, bits_spec, wt_spec],
                    out_specs=o_spec,
                    scratch_shapes=scratch),
                compiler_params=cparams,
                cost_estimate=cost,
            )(x_p, bits_p, wt)

        return out[:N, :self.nclass]


# ---------------------------------------------------------------------------
# Demo / correctness check
# ---------------------------------------------------------------------------
if __name__ == "__main__":
    key = jax.random.PRNGKey(0)
    k_x, k_w = jax.random.split(key)

    # Small shapes consistent with the module (exercise padding paths too:
    # N not a multiple of the row tile rounding is fine, F < 128, nclass < 128).
    N, nfeat, nclass = 24, 96, 10
    x = jax.random.normal(k_x, (N, nfeat), dtype=jnp.float32)

    # combine='max' -> uses W ; combine='cat' -> uses W2. Exercise both.
    model_max = SGC(nfeat, nclass, degree=2, combine="max", bias=False, key=k_w)
    model_cat = SGC(nfeat, nclass, degree=2, combine="cat", bias=False, key=k_w)

    out_max = jax.block_until_ready(model_max(x, training=False))
    out_cat = jax.block_until_ready(model_cat(x, training=False))

    # Eval-mode reference (dropout is identity, so this is exact).
    ref_max = x @ model_max.W.T
    ref_cat = x @ model_cat.W2.T
    assert out_max.shape == (N, nclass) and out_cat.shape == (N, nclass)
    assert jnp.allclose(out_max, ref_max, atol=1e-4, rtol=1e-4)
    assert jnp.allclose(out_cat, ref_cat, atol=1e-4, rtol=1e-4)

    # Training path: dropout bits are deterministic given the seed, so we can
    # check it exactly against a pure-JAX reference.
    seed = 123
    out_train = jax.block_until_ready(model_max(x, training=True, seed=seed))
    bits = jax.random.bits(jax.random.PRNGKey(seed), (N, nfeat), dtype=jnp.uint32)
    keep = bits >= jnp.uint32(model_max._keep_threshold)
    x_drop = jnp.where(keep, x, 0.0) * jnp.float32(model_max._keep_scale)
    ref_train = x_drop @ model_max.W.T
    assert out_train.shape == (N, nclass)
    assert jnp.allclose(out_train, ref_train, atol=1e-4, rtol=1e-4)

    print("KERNEL_OK")
</pallas_src>

<mosaic_0001>
module attributes {stable_mosaic.version = 11 : i64} {
  func.func @_linear_kernel(%arg0: i32, %arg1: i32, %arg2: memref<24x128xf32, #tpu.memory_space<vmem>>, %arg3: memref<128x128xf32, #tpu.memory_space<vmem>>, %arg4: memref<24x128xf32, #tpu.memory_space<vmem>>, %arg5: memref<24x128xf32, #tpu.memory_space<vmem>>) attributes {dimension_semantics = [#tpu.dimension_semantics<parallel>, #tpu.dimension_semantics<arbitrary>], iteration_bounds = array<i64: 1, 1>, scalar_prefetch = 0 : i64, scratch_operands = 1 : i64, tpu.core_type = #tpu.core_type<tc>, window_params = [{transform_indices = @transform_0, window_bounds = array<i64: 24, 128>}, {transform_indices = @transform_1, window_bounds = array<i64: 128, 128>}, {transform_indices = @transform_2, window_bounds = array<i64: 24, 128>}]} {
    %c0_i32 = arith.constant 0 : i32
    %0 = arith.cmpi eq, %arg1, %c0_i32 : i32
    %1 = arith.extui %0 : i1 to i32
    %c0_i32_0 = arith.constant 0 : i32
    %2 = arith.cmpi ne, %1, %c0_i32_0 : i32
    scf.if %2 {
      %cst_10 = arith.constant 0.000000e+00 : f32
      %12 = vector.broadcast %cst_10 : f32 to vector<24x128xf32>
      %c0_11 = arith.constant 0 : index
      %c0_12 = arith.constant 0 : index
      %13 = vector.load %arg5[%c0_11, %c0_12] : memref<24x128xf32, #tpu.memory_space<vmem>>, vector<24x128xf32>
      tpu.vector_store %arg5[%c0_11, %c0_12], %12 {strides = array<i32>} : memref<24x128xf32, #tpu.memory_space<vmem>>, vector<24x128xf32>,
    } else {
    }
    %c0 = arith.constant 0 : index
    %c0_1 = arith.constant 0 : index
    %3 = vector.load %arg5[%c0, %c0_1] : memref<24x128xf32, #tpu.memory_space<vmem>>, vector<24x128xf32>
    %c0_2 = arith.constant 0 : index
    %c0_3 = arith.constant 0 : index
    %4 = vector.load %arg2[%c0_2, %c0_3] : memref<24x128xf32, #tpu.memory_space<vmem>>, vector<24x128xf32>
    %c0_4 = arith.constant 0 : index
    %c0_5 = arith.constant 0 : index
    %5 = vector.load %arg3[%c0_4, %c0_5] : memref<128x128xf32, #tpu.memory_space<vmem>>, vector<128x128xf32>
    %cst = arith.constant dense<0.000000e+00> : vector<24x128xf32>
    %6 = tpu.matmul %4, %5, %cst {dimension_numbers = #tpu.dot_dimension_numbers<[1], [0], [0], [1], [0, 0, 1, 1], [], []>} : vector<24x128xf32>, vector<128x128xf32>, vector<24x128xf32> -> vector<24x128xf32>
    %7 = arith.addf %3, %6 : vector<24x128xf32>
    %c0_6 = arith.constant 0 : index
    %c0_7 = arith.constant 0 : index
    %8 = vector.load %arg5[%c0_6, %c0_7] : memref<24x128xf32, #tpu.memory_space<vmem>>, vector<24x128xf32>
    tpu.vector_store %arg5[%c0_6, %c0_7], %7 {strides = array<i32>} : memref<24x128xf32, #tpu.memory_space<vmem>>, vector<24x128xf32>,
    %c0_i32_8 = arith.constant 0 : i32
    %9 = arith.cmpi eq, %arg1, %c0_i32_8 : i32
    %10 = arith.extui %9 : i1 to i32
    %c0_i32_9 = arith.constant 0 : i32
    %11 = arith.cmpi ne, %10, %c0_i32_9 : i32
    scf.if %11 {
      %c0_10 = arith.constant 0 : index
      %c0_11 = arith.constant 0 : index
      %12 = vector.load %arg5[%c0_10, %c0_11] : memref<24x128xf32, #tpu.memory_space<vmem>>, vector<24x128xf32>
      %c0_12 = arith.constant 0 : index
      %c0_13 = arith.constant 0 : index
      %13 = vector.load %arg4[%c0_12, %c0_13] : memref<24x128xf32, #tpu.memory_space<vmem>>, vector<24x128xf32>
      tpu.vector_store %arg4[%c0_12, %c0_13], %12 {strides = array<i32>} : memref<24x128xf32, #tpu.memory_space<vmem>>, vector<24x128xf32>,
    } else {
    }
    return
  }
  func.func @transform_0(%arg0: i32, %arg1: i32) -> (i32, i32) {
    %c0_i32 = arith.constant 0 : i32
    return %arg0, %arg1 : i32, i32
  }
  func.func @transform_1(%arg0: i32, %arg1: i32) -> (i32, i32) {
    %c0_i32 = arith.constant 0 : i32
    %c0_i32_0 = arith.constant 0 : i32
    return %arg1, %c0_i32 : i32, i32
  }
  func.func @transform_2(%arg0: i32, %arg1: i32) -> (i32, i32) {
    %c0_i32 = arith.constant 0 : i32
    %c0_i32_0 = arith.constant 0 : i32
    return %arg0, %c0_i32 : i32, i32
  }
}

</mosaic_0001>

<bundles_post_ra>
// kernel: tpu_custom_call.1
= control target key start
LH: loop header
LB: loop body
LE: loop exit
PB: predicated region body
PF: predicated region fallthrough
CT: control target
= control target key end

     0   :  { %7 = vsyncpa [#allocation4], 0  ;;  %s425_s0 = inlined_call_operand.hbm [shape: f32[24,128], index: 0, kind: input, shape index: {}]   ;;  %s426_s1 = inlined_call_operand.hbm [shape: f32[128,128], index: 1, kind: input, shape index: {}]   ;;  %s427_s2 = inlined_call_operand.hbm [shape: f32[24,128], index: 2, kind: output, shape index: {}]  }
   0x1   :  { %8 = vsyncpa [#allocation7], 0 }
   0x2   :  { %9 = vsyncpa [#allocation5], 0  ;;  %s347_s9 = smov [#allocation3]  }
   0x3   :  { %s15_s10 = sshll.u32 %s347_s9, 4  ;;  %s16_s10 = int_to_ptr.vmem [resolvable:$true] %s15_s10 }
   0x4   :  { %s289_s11 = scalar_lea.vmem %s16_s10, 384  ;;  %p294_p1 = scmp.lt.s32.totalorder %s16_s10, %s16_s10 }
   0x5   :  { %p290_p0 = scmp.ne.s32.totalorder %s16_s10, %s289_s11  ;;  %p295_p2 = scmp.lt.s32.totalorder %s289_s11, %s289_s11 }
   0x7   :  { %p296_p3 = por %p295_p2, %p294_p1 }
   0x9   :  { %p297_p4 = pnand %p296_p3, %p290_p0 }
   0xb   :  { %300 = shalt.err (!%p297_p4)
}
   0xc   :  { %s348_s12 = smov 128   ;;  %s349_s13 = smov 8  }
   0xd   :  { %21 = dma.hbm_to_vmem [thread:$0]  %s425_s0, 384, %s16_s10, [#allocation4], %s348_s12, %s348_s12, %s349_s13  }
   0xe   :  { %s350_s16 = smov [#allocation6]  }
   0xf   :  { %s27_s17 = sshll.u32 %s350_s16, 4  ;;  %s28_s17 = int_to_ptr.vmem [resolvable:$true] %s27_s17 }
  0x10   :  { %s309_s18 = scalar_lea.vmem %s28_s17, 2048  ;;  %p314_p6 = scmp.lt.s32.totalorder %s28_s17, %s28_s17 }
  0x11   :  { %p310_p5 = scmp.ne.s32.totalorder %s28_s17, %s309_s18  ;;  %p315_p7 = scmp.lt.s32.totalorder %s309_s18, %s309_s18 }
  0x13   :  { %p316_p8 = por %p315_p7, %p314_p6 }
  0x15   :  { %p317_p9 = pnand %p316_p8, %p310_p5 }
  0x17   :  { %320 = shalt.err (!%p317_p9)
}
  0x18   :  { %33 = dma.hbm_to_vmem [thread:$0]  %s426_s1, 2048, %s28_s17, [#allocation7], %s348_s12, %s348_s12, %s349_s13  }
  0x19   :  { %341 = dma.done.wait [#allocation4], 384  }
  0x1a   :  { %342 = vsyncadd [#allocation4], 4294966912 }
  0x1b   :  { %343 = dma.done.wait [#allocation7], 2048  }
  0x1c   :  { %344 = vsyncadd [#allocation7], 4294965248  ;;  %v351_v0 = vmov 0.0   ;;  %vm352_vm0 = vmmov 0   ;;  %v68_v1 = vld [vmem:[#allocation6 + $0x78] sm:$0xff]  ;;  %v67_v2 = vld [vmem:[#allocation6 + $0x70] sm:$0xff] }
  0x1d   :  { %242 = vmatprep.subr.mxu1 %v351_v0  ;;  %201 = vmatprep.subr.mxu0 %v351_v0  ;;  %v66_v3 = vld [vmem:[#allocation6 + $0x68] sm:$0xff]  ;;  %v65_v4 = vld [vmem:[#allocation6 + $0x60] sm:$0xff]  ;;  %v64_v5 = vld [vmem:[#allocation6 + $0x58] sm:$0xff]  ;;  %s353_s0 = smov [#allocation8]  }
  0x1e   :  { %236 = vmatprep.mubr.msk.f32.mxu1 %vm352_vm0, %v351_v0  ;;  %233 = vmatprep.mubr.msk.f32.mxu0 %vm352_vm0, %v351_v0  ;;  %v63_v6 = vld [vmem:[#allocation6 + $0x50] sm:$0xff]  ;;  %v62_v7 = vld [vmem:[#allocation6 + $0x48] sm:$0xff]  ;;  %v61_v8 = vld [vmem:[#allocation6 + $0x40] sm:$0xff]  ;;  %s169_s1 = sshll.u32 %s353_s0, 4  ;;  %s170_s1 = int_to_ptr.vmem [resolvable:$true] %s169_s1 }
  0x1f   :  { %258 = vmatpush3.msra.mxu1 %v68_v1  ;;  %202 = vmatpush3.msra.mxu0 %v68_v1  ;;  %v60_v9 = vld [vmem:[#allocation6 + $0x38] sm:$0xff]  ;;  %v59_v10 = vld [vmem:[#allocation6 + $0x30] sm:$0xff]  ;;  %v58_v11 = vld [vmem:[#allocation6 + $0x28] sm:$0xff]  ;;  %s321_s21 = scalar_lea.vmem %s170_s1, 384  ;;  %p326_p11 = scmp.lt.s32.totalorder %s170_s1, %s170_s1 }
  0x20   :  { %243 = vmatprep.subr.mxu1 %v351_v0  ;;  %203 = vmatprep.subr.mxu0 %v351_v0  ;;  %v57_v12 = vld [vmem:[#allocation6 + $0x20] sm:$0xff]  ;;  %v56_v13 = vld [vmem:[#allocation6 + $0x18] sm:$0xff]  ;;  %v55_v14 = vld [vmem:[#allocation6 + $0x10] sm:$0xff]  ;;  %p322_p10 = scmp.ne.s32.totalorder %s170_s1, %s321_s21  ;;  %p327_p12 = scmp.lt.s32.totalorder %s321_s21, %s321_s21 }
  0x21   :  { %259 = vmatpush3.msra.mxu1 %v67_v2  ;;  %204 = vmatpush3.msra.mxu0 %v67_v2  ;;  %v54_v15 = vld [vmem:[#allocation6 + $0x8] sm:$0xff]  ;;  %v53_v16 = vld [vmem:[#allocation6] sm:$0xff]  ;;  %v51_v17 = vld [vmem:[#allocation3 + $0x8] sm:$0xff] }
  0x22   :  { %244 = vmatprep.subr.mxu1 %v351_v0  ;;  %205 = vmatprep.subr.mxu0 %v351_v0  ;;  %v50_v18 = vld [vmem:[#allocation3] sm:$0xff]  ;;  %v52_v19 = vld [vmem:[#allocation3 + $0x10] sm:$0xff]  ;;  %p328_p13 = por %p327_p12, %p326_p11 }
  0x23   :  { %260 = vmatpush3.msra.mxu1 %v66_v3  ;;  %206 = vmatpush3.msra.mxu0 %v66_v3 }
  0x24   :  { %245 = vmatprep.subr.mxu1 %v351_v0  ;;  %207 = vmatprep.subr.mxu0 %v351_v0  ;;  %p329_p0 = pnand %p328_p13, %p322_p10 }
  0x25   :  { %261 = vmatpush3.msra.mxu1 %v65_v4  ;;  %208 = vmatpush3.msra.mxu0 %v65_v4 }
  0x26   :  { %246 = vmatprep.subr.mxu1 %v351_v0  ;;  %209 = vmatprep.subr.mxu0 %v351_v0 }
  0x27   :  { %262 = vmatpush3.msra.mxu1 %v64_v5  ;;  %210 = vmatpush3.msra.mxu0 %v64_v5 }
  0x28   :  { %247 = vmatprep.subr.mxu1 %v351_v0  ;;  %211 = vmatprep.subr.mxu0 %v351_v0 }
  0x29   :  { %263 = vmatpush3.msra.mxu1 %v63_v6  ;;  %212 = vmatpush3.msra.mxu0 %v63_v6 }
  0x2a   :  { %248 = vmatprep.subr.mxu1 %v351_v0  ;;  %213 = vmatprep.subr.mxu0 %v351_v0 }
  0x2b   :  { %264 = vmatpush3.msra.mxu1 %v62_v7  ;;  %214 = vmatpush3.msra.mxu0 %v62_v7 }
  0x2c   :  { %249 = vmatprep.subr.mxu1 %v351_v0  ;;  %215 = vmatprep.subr.mxu0 %v351_v0 }
  0x2d   :  { %265 = vmatpush3.msra.mxu1 %v61_v8  ;;  %216 = vmatpush3.msra.mxu0 %v61_v8 }
  0x2e   :  { %250 = vmatprep.subr.mxu1 %v351_v0  ;;  %217 = vmatprep.subr.mxu0 %v351_v0 }
  0x2f   :  { %266 = vmatpush3.msra.mxu1 %v60_v9  ;;  %218 = vmatpush3.msra.mxu0 %v60_v9 }
  0x30   :  { %251 = vmatprep.subr.mxu1 %v351_v0  ;;  %219 = vmatprep.subr.mxu0 %v351_v0 }
  0x31   :  { %267 = vmatpush3.msra.mxu1 %v59_v10  ;;  %220 = vmatpush3.msra.mxu0 %v59_v10 }
  0x32   :  { %252 = vmatprep.subr.mxu1 %v351_v0  ;;  %221 = vmatprep.subr.mxu0 %v351_v0 }
  0x33   :  { %268 = vmatpush3.msra.mxu1 %v58_v11  ;;  %222 = vmatpush3.msra.mxu0 %v58_v11 }
  0x34   :  { %253 = vmatprep.subr.mxu1 %v351_v0  ;;  %223 = vmatprep.subr.mxu0 %v351_v0 }
  0x35   :  { %269 = vmatpush3.msra.mxu1 %v57_v12  ;;  %224 = vmatpush3.msra.mxu0 %v57_v12 }
  0x36   :  { %254 = vmatprep.subr.mxu1 %v351_v0  ;;  %225 = vmatprep.subr.mxu0 %v351_v0 }
  0x37   :  { %270 = vmatpush3.msra.mxu1 %v56_v13  ;;  %226 = vmatpush3.msra.mxu0 %v56_v13 }
  0x38   :  { %255 = vmatprep.subr.mxu1 %v351_v0  ;;  %227 = vmatprep.subr.mxu0 %v351_v0 }
  0x39   :  { %271 = vmatpush3.msra.mxu1 %v55_v14  ;;  %228 = vmatpush3.msra.mxu0 %v55_v14 }
  0x3a   :  { %256 = vmatprep.subr.mxu1 %v351_v0  ;;  %229 = vmatprep.subr.mxu0 %v351_v0 }
  0x3b   :  { %272 = vmatpush3.msra.mxu1 %v54_v15  ;;  %230 = vmatpush3.msra.mxu0 %v54_v15 }
  0x3c   :  { %257 = vmatprep.subr.mxu1 %v351_v0  ;;  %231 = vmatprep.subr.mxu0 %v351_v0 }
  0x3d   :  { %273 = vmatpush3.msra.mxu1 %v53_v16  ;;  %232 = vmatpush3.msra.mxu0 %v53_v16 }
  0x3e   :  { %237 = vmatmul.mubr.f32.vlgmr.msra.gmra.mxu1 %v51_v17  ;;  %234 = vmatmul.mubr.f32.vlgmr.msra.gmra.mxu0 %v50_v18 }
  0x3f   :  { %239 = vmatprep.mubr.msk.f32.mxu1 %vm352_vm0, %v351_v0 }
  0x42   :  { %240 = vmatmul.mubr.f32.gmra.mxu1 %v52_v19 }
  0xfe   :  { %v140_v20 = vpop.f32.mrf.mxu1  ;;  %v135_v21 = vpop.f32.mrf.mxu0 }
  0xff   :  { %162 = vst [vmem:[#allocation8 + $0x8] sm:$0xff] %v140_v20  ;;  %161 = vst [vmem:[#allocation8] sm:$0xff] %v135_v21 }
 0x100   :  { %v238_v22 = vpop.f32.mrf.mxu1  ;;  %v235_v23 = vpop.f32.mrf.mxu0 }
 0x102   :  { %v145_v24 = vpop.f32.mrf.mxu1 }
 0x103   :  { %163 = vst [vmem:[#allocation8 + $0x10] sm:$0xff] %v145_v24 }
 0x104   :  { %v241_v25 = vpop.f32.mrf.mxu1 }
 0x105   :  { %332 = shalt.err (!%p329_p0)
}
 0x106   :  { %175 = dma.vmem_to_hbm [thread:$0]  %s170_s1, 384, %s427_s2, [#allocation5], %s348_s12, %s348_s12, %s349_s13  }
 0x107   :  { %345 = dma.done.wait [#allocation5], 384  }
 0x108   :  { %346 = vsyncadd [#allocation5], 4294966912 }
 0x109   :  { %179 = vsyncpa [#allocation4], 1 }
 0x10a   :  { %180 = vsyncpa [#allocation7], 1 }
 0x10b   :  { %181 = vsyncpa [#allocation5], 1 }

</bundles_post_ra>
